<compile_context>
chip_gen: v7x
topology: tpu7x:2x2x1
jax: 0.10.0
libtpu: 0.0.40
codegen_flags: <defaults>
</compile_context>

<pallas_src>
import jax
import jax.numpy as jnp
from jax.experimental import pallas as pl
from jax.experimental.pallas import tpu as pltpu

_LANE = 128
_SUBLANE = 8


def _make_groupnorm2d_kernel(group: int, gamma: float, beta: float, eps: float):
    """Kernel body shared by the 4-D (lane-aligned) and 3-D (fallback) block layouts.

    The block always carries the GROUP axis at dim 1; every lane column is reduced over
    that axis independently, so tiling the trailing axes needs no cross-tile reduction.
    """
    inv_gm1 = 1.0 / float(group - 1)  # torch.var default: unbiased (G-1)

    def kernel(x_ref, o_ref):
        x = x_ref[...].astype(jnp.float32)
        mean = jnp.mean(x, axis=1, keepdims=True)
        diff = x - mean
        var = jnp.sum(diff * diff, axis=1, keepdims=True) * inv_gm1
        # Fold gamma into the per-column scale: one mul + one add per element afterwards.
        scale = jax.lax.rsqrt(var + eps) * gamma
        o_ref[...] = (diff * scale + beta).astype(o_ref.dtype)

    return kernel


def group_norm_2d(x, *, group: int = 32, gamma: float = 1.0, beta: float = 0.5,
                  eps: float = 1e-5, block_rows=None, target_block_bytes=1 << 20):
    """GroupNorm2D forward matching the reference PyTorch module exactly.

    x: (N, C, H, W), C must be divisible by `group`.
    block_rows: optional override for the number of 128-lane rows per tile (testing/tuning).
    """
    if x.ndim != 4:
        raise ValueError(f"expected 4D input (got {x.ndim}D input)")
    N, C, H, W = x.shape
    if C % group != 0:
        raise ValueError("C must be divisible by group")
    M = (C // group) * H * W
    itemsize = jnp.dtype(x.dtype).itemsize

    kernel = _make_groupnorm2d_kernel(group, gamma, beta, eps)

    # Advisory scheduling hint: memory-bound streaming op (read + write every element once).
    cost = pl.CostEstimate(
        flops=int(6 * x.size),
        transcendentals=int(N * M),
        bytes_accessed=int(2 * x.size * itemsize),
    )
    cparams = pltpu.CompilerParams(dimension_semantics=("parallel", "parallel"))

    if M % _LANE == 0:
        # Preferred path: (N, G, R, 128) layout; GROUP is a leading dim of the block.
        R = M // _LANE
        if block_rows is not None:
            ts = int(block_rows)
        else:
            ts = max(_SUBLANE, target_block_bytes // (group * _LANE * itemsize))
        if ts >= R:
            ts = R                                      # full extent: no alignment requirement
        else:
            ts = max(_SUBLANE, (ts // _SUBLANE) * _SUBLANE)  # (8,128)-aligned partial tile
        x_r = x.reshape(N, group, R, _LANE)             # contiguous reshape: no data movement
        grid = (N, pl.cdiv(R, ts))
        block = (1, group, ts, _LANE)
        index_map = lambda n, r: (n, 0, r, 0)
    else:
        # Fallback: (N, G, M) layout (reduce over the sublane axis). Remainder tiles are
        # masked by Pallas; lane columns are independent, so OOB padding never corrupts
        # any in-bounds output element.
        block_bytes = group * M * itemsize
        if M < _LANE or block_bytes <= (4 << 20):
            tm = M                                      # full extent: no alignment requirement
        else:
            tm = min(2048, (M // _LANE) * _LANE)        # lane-aligned tiles, masked last tile
        x_r = x.reshape(N, group, M)
        grid = (N, pl.cdiv(M, tm))
        block = (1, group, tm)
        index_map = lambda n, m: (n, 0, m)

    out_r = pl.pallas_call(
        kernel,
        out_shape=jax.ShapeDtypeStruct(x_r.shape, x.dtype),
        grid_spec=pltpu.PrefetchScalarGridSpec(
            num_scalar_prefetch=0,
            grid=grid,
            in_specs=[pl.BlockSpec(block, index_map)],
            out_specs=pl.BlockSpec(block, index_map),
        ),
        compiler_params=cparams,
        cost_estimate=cost,
    )(x_r)

    return out_r.reshape(N, C, H, W)


def _reference_jax(x, *, group, gamma, beta, eps):
    """Pure-JAX reference mirroring the torch code, for sanity checks."""
    N, C, H, W = x.shape
    xr = x.reshape(N, group, C // group, H, W).astype(jnp.float32)
    mean = jnp.mean(xr, axis=1, keepdims=True)
    var = jnp.sum((xr - mean) ** 2, axis=1, keepdims=True) / (group - 1)
    y = (xr - mean) / jnp.sqrt(var + eps)
    return (y.reshape(N, C, H, W) * gamma + beta).astype(x.dtype)


if __name__ == "__main__":
    gamma, beta, eps = 1.0, 0.5, 1e-5
    key = jax.random.PRNGKey(0)
    k1, k2, k3, k4 = jax.random.split(key, 4)

    # 1) Small demo (4-D lane-aligned path, single tile per batch element).
    x1 = jax.random.normal(k1, (2, 8, 16, 16), dtype=jnp.float32)
    o1 = jax.block_until_ready(group_norm_2d(x1, group=4, gamma=gamma, beta=beta, eps=eps))
    r1 = _reference_jax(x1, group=4, gamma=gamma, beta=beta, eps=eps)
    assert o1.shape == x1.shape
    assert jnp.allclose(o1, r1, atol=1e-5, rtol=1e-5), "mismatch (demo)"

    # 2) Multi-tile path along M: forces grid=(2, 2) with 8-row (1024-wide) lane-dense blocks.
    x2 = jax.random.normal(k2, (2, 8, 32, 32), dtype=jnp.float32)
    o2 = jax.block_until_ready(
        group_norm_2d(x2, group=4, gamma=gamma, beta=beta, eps=eps, block_rows=8))
    r2 = _reference_jax(x2, group=4, gamma=gamma, beta=beta, eps=eps)
    assert jnp.allclose(o2, r2, atol=1e-5, rtol=1e-5), "mismatch (tiled M)"

    # 3) Module-default group=32 with bf16 kept bf16 on the HBM side (upcast only in VMEM).
    x3 = jax.random.normal(k3, (2, 64, 16, 16), dtype=jnp.bfloat16)
    o3 = jax.block_until_ready(group_norm_2d(x3, group=32, gamma=gamma, beta=beta, eps=eps))
    r3 = _reference_jax(x3, group=32, gamma=gamma, beta=beta, eps=eps)
    assert o3.dtype == x3.dtype
    assert jnp.allclose(o3.astype(jnp.float32), r3.astype(jnp.float32),
                        atol=5e-2, rtol=5e-2), "mismatch (bf16, group=32)"

    # 4) Non-lane-aligned M (M = 288): exercises the 3-D fallback layout.
    x4 = jax.random.normal(k4, (2, 8, 12, 12), dtype=jnp.float32)
    o4 = jax.block_until_ready(group_norm_2d(x4, group=4, gamma=gamma, beta=beta, eps=eps))
    r4 = _reference_jax(x4, group=4, gamma=gamma, beta=beta, eps=eps)
    assert jnp.allclose(o4, r4, atol=1e-5, rtol=1e-5), "mismatch (fallback M)"

    print("KERNEL_OK")
</pallas_src>

<mosaic_0001>
module attributes {stable_mosaic.version = 11 : i64} {
  func.func @kernel(%arg0: i32, %arg1: i32, %arg2: memref<1x4x4x128xf32, #tpu.memory_space<vmem>>, %arg3: memref<1x4x4x128xf32, #tpu.memory_space<vmem>>) attributes {dimension_semantics = [#tpu.dimension_semantics<parallel>, #tpu.dimension_semantics<parallel>], iteration_bounds = array<i64: 2, 1>, scalar_prefetch = 0 : i64, scratch_operands = 0 : i64, tpu.core_type = #tpu.core_type<tc>, window_params = [{transform_indices = @transform_0, window_bounds = array<i64: 1, 4, 4, 128>}, {transform_indices = @transform_1, window_bounds = array<i64: 1, 4, 4, 128>}]} {
    %c0 = arith.constant 0 : index
    %c0_0 = arith.constant 0 : index
    %c0_1 = arith.constant 0 : index
    %c0_2 = arith.constant 0 : index
    %0 = vector.load %arg2[%c0, %c0_0, %c0_1, %c0_2] : memref<1x4x4x128xf32, #tpu.memory_space<vmem>>, vector<1x4x4x128xf32>
    %cst = arith.constant dense<0.000000e+00> : vector<1x4x128xf32>
    %1 = vector.multi_reduction <add>, %0, %cst [1] : vector<1x4x4x128xf32> to vector<1x4x128xf32>
    %2 = vector.shape_cast %1 : vector<1x4x128xf32> to vector<1x1x4x128xf32>
    %cst_3 = arith.constant 4.000000e+00 : f32
    %3 = vector.broadcast %cst_3 : f32 to vector<1x1x4x128xf32>
    %4 = arith.divf %2, %3 : vector<1x1x4x128xf32>
    %5 = vector.broadcast %4 : vector<1x1x4x128xf32> to vector<1x4x4x128xf32>
    %6 = arith.subf %0, %5 : vector<1x4x4x128xf32>
    %7 = arith.mulf %6, %6 : vector<1x4x4x128xf32>
    %cst_4 = arith.constant dense<0.000000e+00> : vector<1x4x128xf32>
    %8 = vector.multi_reduction <add>, %7, %cst_4 [1] : vector<1x4x4x128xf32> to vector<1x4x128xf32>
    %9 = vector.shape_cast %8 : vector<1x4x128xf32> to vector<1x1x4x128xf32>
    %cst_5 = arith.constant 0.333333343 : f32
    %10 = vector.broadcast %cst_5 : f32 to vector<1x1x4x128xf32>
    %11 = arith.mulf %9, %10 : vector<1x1x4x128xf32>
    %cst_6 = arith.constant 9.99999974E-6 : f32
    %12 = vector.broadcast %cst_6 : f32 to vector<1x1x4x128xf32>
    %13 = arith.addf %11, %12 : vector<1x1x4x128xf32>
    %14 = math.rsqrt %13 : vector<1x1x4x128xf32>
    %cst_7 = arith.constant 1.000000e+00 : f32
    %15 = vector.broadcast %cst_7 : f32 to vector<1x1x4x128xf32>
    %16 = arith.mulf %14, %15 : vector<1x1x4x128xf32>
    %17 = vector.broadcast %16 : vector<1x1x4x128xf32> to vector<1x4x4x128xf32>
    %18 = arith.mulf %6, %17 : vector<1x4x4x128xf32>
    %cst_8 = arith.constant 5.000000e-01 : f32
    %19 = vector.broadcast %cst_8 : f32 to vector<1x4x4x128xf32>
    %20 = arith.addf %18, %19 : vector<1x4x4x128xf32>
    %c0_9 = arith.constant 0 : index
    %c0_10 = arith.constant 0 : index
    %c0_11 = arith.constant 0 : index
    %c0_12 = arith.constant 0 : index
    %21 = vector.load %arg3[%c0_9, %c0_10, %c0_11, %c0_12] : memref<1x4x4x128xf32, #tpu.memory_space<vmem>>, vector<1x4x4x128xf32>
    tpu.vector_store %arg3[%c0_9, %c0_10, %c0_11, %c0_12], %20 {strides = array<i32>} : memref<1x4x4x128xf32, #tpu.memory_space<vmem>>, vector<1x4x4x128xf32>,
    return
  }
  func.func @transform_0(%arg0: i32, %arg1: i32) -> (i32, i32, i32, i32) {
    %c0_i32 = arith.constant 0 : i32
    %c0_i32_0 = arith.constant 0 : i32
    %c0_i32_1 = arith.constant 0 : i32
    return %arg0, %c0_i32, %arg1, %c0_i32_0 : i32, i32, i32, i32
  }
  func.func @transform_1(%arg0: i32, %arg1: i32) -> (i32, i32, i32, i32) {
    %c0_i32 = arith.constant 0 : i32
    %c0_i32_0 = arith.constant 0 : i32
    %c0_i32_1 = arith.constant 0 : i32
    return %arg0, %c0_i32, %arg1, %c0_i32_0 : i32, i32, i32, i32
  }
}

</mosaic_0001>

<bundles_post_ra>
// kernel: tpu_custom_call.1
= control target key start
LH: loop header
LB: loop body
LE: loop exit
PB: predicated region body
PF: predicated region fallthrough
CT: control target
= control target key end

     0   :  { %6 = vsyncpa [#allocation3], 0  ;;  %s698_s0 = inlined_call_operand.hbm [shape: f32[2,4,4,128], index: 0, kind: input, shape index: {}]   ;;  %s699_s1 = inlined_call_operand.hbm [shape: f32[2,4,4,128], index: 1, kind: output, shape index: {}]  }
   0x1   :  { %8 = vsyncpa [#allocation3 + $0x1], 0 }
   0x2   :  { %9 = vsyncpa [#allocation4], 0 }
   0x3   :  { %11 = vsyncpa [#allocation4 + $0x1], 0  ;;  %s511_s6 = smov 0   ;;  %s513_s7 = smov 0  }
   0x4   :  { %s515_s8 = smov 0   ;;  %s517_s9 = smov 0  }
   0x5   :  { %s519_s10 = smov 0   ;;  %s521_s11 = smov 0  }
   0x6 LB: > { %s296_s12 = sadd.s32 4294967295, %s493_s11   ;;  %s297_s13 = sadd.s32 4294967294, %s493_s11   ;;  %s493_s11 = sphi %s521_s11, %s17_s11   ;;  %s489_s10 = sphi %s519_s10, %s714_s10   ;;  %s485_s9 = sphi %s517_s9, %s713_s9   ;;  %s481_s8 = sphi %s515_s8, %s712_s8   ;;  %s477_s7 = sphi %s513_s7, %s711_s7   ;;  %s473_s6 = sphi %s511_s6, %s710_s6  }
   0x7   : > { %s29_s14 = sadd.s32 1, %s489_s10  ;;  %s38_s15 = sadd.s32 1, %s481_s8 }
   0x8   : > { %p31_p0 = scmp.ge.s32.totalorder %s29_s14, 2  ;;  %p45_p1 = scmp.ne.s32.totalorder %s481_s8, %s477_s7 }
   0x9   : > { %p46_p2 = scmp.eq.s32.totalorder %s493_s11, 0  ;;  %p51_p3 = scmp.ne.s32.totalorder %s477_s7, %s473_s6 }
   0xa   : > { %s716_s14 = smov (%p31_p0, %s29_s14), 0  ;;  %p52_p5 = scmp.eq.s32.totalorder %s296_s12, 0 }
   0xb   : > { %p552_p4 = por %p46_p2, %p45_p1  ;;  %s33_s17 = ssub.s32 %s489_s10, %s716_s14 }
   0xc   : > { %p77_p6 = scmp.eq.s32.totalorder %s296_s12, 1  ;;  %p36_p7 = scmp.eq.s32.totalorder %s33_s17, 0 }
   0xd   : > { %p558_p8 = por %p52_p5, %p51_p3  ;;  %p83_p10 = scmp.eq.s32.totalorder %s297_s13, 1 }
   0xe   : > { %p562_p9 = por %p77_p6, %p45_p1  ;;  %p325_p13 = scmp.lt.s32.totalorder %s493_s11, 2 }
   0xf   : > { %s567_s20 = scalar_select %p36_p7, %s481_s8, %s38_s15  }
  0x10   : > { %s703_s19 = scalar_select %p562_p9, 1, 0 }
  0x11   : > { %p569_p11 = por %p83_p10, %p51_p3  ;;  %s103_s22 = sand.u32 1, %s481_s8  }
  0x12   : > { %s300_s23 = sshll.u32 %s103_s22, 4  ;;  %s311_s24 = sshll.u32 %s489_s10, 8 }
  0x13   : > { %s704_s21 = scalar_select %p569_p11, 1, 0 }
  0x14   : > { %s580_s27 = scalar_lea.hbm %s698_s0, %s311_s24  ;;  %s107_s28 = scalar_lea.vmem [#allocation2], %s300_s23 }
  0x15   : > { %s115_s29 = sshll.u32 %s107_s28, 4  ;;  %p586_p0 = pnand %p325_p13, %p552_p4  ;;  %s582_s29 = int_to_ptr.vmem [resolvable:$true] %s115_s29 }
  0x16   : > { %s591_s2 = scalar_lea.sflag [#allocation3], %s103_s22  ;;  %s381_s3 = scalar_lea.hbm %s580_s27, 256 }
  0x17   : > { %p382_p2 = scmp.ne.s32.totalorder %s580_s27, %s381_s3  ;;  %p383_p3 = pneg %p586_p0 }
  0x18   : > { %s386_s12 = scalar_lea.hbm %s698_s0, 512  ;;  %p387_p4 = scmp.lt.u32.totalorder %s580_s27, %s698_s0 }
  0x19   : > { %p384_p5 = pnand %p383_p3, %p382_p2  ;;  %p388_p7 = scmp.lt.u32.totalorder %s386_s12, %s381_s3 }
  0x1a   : > { %p390_p13 = scmp.lt.u32.totalorder %s381_s3, %s580_s27 }
  0x1b   : > { %p385_p6 = pneg %p384_p5  ;;  %p389_p10 = por %p388_p7, %p387_p4 }
  0x1d   : > { %p391_p12 = por %p390_p13, %p389_p10 }
  0x1f   : > { %p392_p1 = pnand %p391_p12, %p385_p6 }
  0x21   : > { %395 = shalt.err (!%p392_p1)
}
  0x22   : > { %s396_s16 = scalar_lea.vmem %s582_s29, 256  ;;  %s495_s17 = smov [#allocation2]  }
  0x23   : > { %p397_p2 = scmp.ne.s32.totalorder %s582_s29, %s396_s16  ;;  %s401_s22 = sshll.u32 %s495_s17, 4  ;;  %s402_s22 = int_to_ptr.vmem [resolvable:$false] %s401_s22 }
  0x24   : > { %s403_s23 = scalar_lea.vmem %s402_s22, 512  ;;  %p404_p9 = scmp.lt.s32.totalorder %s582_s29, %s402_s22 }
  0x25   : > { %p399_p5 = pnand %p397_p2, %p383_p3  ;;  %p405_p4 = scmp.lt.s32.totalorder %s403_s23, %s396_s16 }
  0x27   : > { %p400_p11 = pneg %p399_p5  ;;  %p406_p7 = por %p405_p4, %p404_p9 }
  0x29   : > { %p407_p10 = pnand %p406_p7, %p400_p11 }
  0x2b   : > { %410 = shalt.err (!%p407_p10)
}
  0x2c   : > { %s496_s24 = smov 64   ;;  %s497_s25 = smov 4  }
  0x2d   : > { %320 = dma.hbm_to_vmem [thread:$0]  (!%p586_p0), %s580_s27, 256, %s582_s29, %s591_s2, %s496_s24, %s496_s24, %s497_s25  }
  0x2e   : > { %p123_p12 = scmp.lt.s32.totalorder %s493_s11, 3  ;;  %p706_p1 = scmp.ge.s32.totalorder %s493_s11, 1 }
  0x30   : > { %p124_p3 = pnand %p706_p1, %p123_p12 }
  0x31   : > { %s623_s26 = sand.u32 (!%p124_p3), 1, %s477_s7  }
  0x32   : > { %127 = sbr.rel (%p124_p3) target bundleno = 114 (0x72), region = 24  ;;  %s304_s28 = sshll.u32 (!%p124_p3), %s623_s26, 4 }
  0x33   : > { %s130_s3 = scalar_lea.sflag (!%p124_p3), [#allocation3], %s623_s26  ;;  %s133_s4 = scalar_lea.vmem (!%p124_p3), [#allocation2], %s304_s28 }
  0x39   : > { %464 = dma.done.wait (%p558_p8), %s130_s3, 256  }
  0x3a   : > { %466 = vsyncadd (%p558_p8), %s130_s3, 4294967040  ;;  %vm156_vm0 = vcmask 1043456   ;;  %v152_v0 = vld [vmem:[%s133_s4] sm:$0xf]  ;;  %v153_v1 = vld [vmem:[%s133_s4 + $0x4] sm:$0xf] }
  0x3b   : > { %v154_v2 = vld [vmem:[%s133_s4 + $0x8] sm:$0xf]  ;;  %v155_v3 = vld [vmem:[%s133_s4 + $0xc] sm:$0xf]  ;;  %v157_v4 = vsel %vm156_vm0, %v152_v0, 0.0  ;;  %v158_v5 = vsel %vm156_vm0, %v153_v1, 0.0 }
  0x3c   : > { %v160_v6 = vsel %vm156_vm0, %v154_v2, 0.0  ;;  %v159_v7 = vadd.f32 %v158_v5, %v157_v4  ;;  %v162_v8 = vsel %vm156_vm0, %v155_v3, 0.0  ;;  %s151_s18 = scalar_lea.vmem [#allocation5], %s304_s28  ;;  %s312_s29 = sshll.u32 %s485_s9, 8 }
  0x3d   : > { %s211_s27 = sshll.u32 %s151_s18, 4  ;;  %s649_s5 = scalar_lea.hbm %s699_s1, %s312_s29  ;;  %s644_s27 = int_to_ptr.vmem [resolvable:$true] %s211_s27 }
  0x3e   : > { %v161_v9 = vadd.f32 %v160_v6, %v159_v7  ;;  %s197_s9 = scalar_lea.sflag [#allocation4], %s623_s26  ;;  %s411_s12 = scalar_lea.vmem %s644_s27, 256 }
  0x3f   : > { %p412_p8 = scmp.ne.s32.totalorder %s644_s27, %s411_s12  ;;  %p707_p9 = scmp.ne.s32.totalorder %s703_s19, 0 }
  0x40   : > { %v163_v10 = vadd.f32 %v162_v8, %v161_v9  ;;  %s498_s13 = smov [#allocation5]  }
  0x41   : > { %p413_p11 = pnand %p412_p8, %p707_p9  ;;  %s415_s15 = sshll.u32 %s498_s13, 4  ;;  %s416_s15 = int_to_ptr.vmem [resolvable:$false] %s415_s15 }
  0x42   : > { %v165_v11 = vmul.f32 0.25, %v163_v10  ;;  %s417_s16 = scalar_lea.vmem %s416_s15, 512  ;;  %p418_p6 = scmp.lt.s32.totalorder %s644_s27, %s416_s15 }
  0x43   : > { %p414_p0 = pneg %p413_p11  ;;  %p419_p13 = scmp.lt.s32.totalorder %s417_s16, %s411_s12 }
  0x44   : > { %v166_v12 = vsub.f32 %v152_v0, %v165_v11  ;;  %v167_v13 = vsub.f32 %v153_v1, %v165_v11  ;;  %v168_v14 = vsub.f32 %v154_v2, %v165_v11  ;;  %v169_v15 = vsub.f32 %v155_v3, %v165_v11 }
  0x45   : > { %p420_p2 = por %p419_p13, %p418_p6 }
  0x46   : > { %v170_v16 = vmul.f32 %v166_v12, %v166_v12  ;;  %v171_v17 = vmul.f32 %v167_v13, %v167_v13  ;;  %v172_v18 = vmul.f32 %v168_v14, %v168_v14  ;;  %v173_v19 = vmul.f32 %v169_v15, %v169_v15 }
  0x47   : > { %p421_p5 = pnand %p420_p2, %p414_p0 }
  0x48   : > { %v174_v20 = vsel %vm156_vm0, %v170_v16, 0.0  ;;  %v175_v21 = vsel %vm156_vm0, %v171_v17, 0.0  ;;  %v177_v22 = vsel %vm156_vm0, %v172_v18, 0.0  ;;  %v179_v24 = vsel %vm156_vm0, %v173_v19, 0.0 }
  0x49   : > { %v176_v23 = vadd.f32 %v175_v21, %v174_v20 }
  0x4b   : > { %v178_v25 = vadd.f32 %v177_v22, %v176_v23 }
  0x4d   : > { %v180_v26 = vadd.f32 %v179_v24, %v178_v25 }
  0x4f   : > { %v181_v27 = vmul.f32 0.33333334, %v180_v26 }
  0x51   : > { %v182_v28 = vadd.f32 1e-05, %v181_v27 }
  0x53   : > { %379 = vrsqrt.f32 %v182_v28 }
  0x5d   : > { %v380_v29 = vpop.eup %379 }
  0x5e   : > { %v184_v30 = vmul.f32 %v380_v29, %v166_v12  ;;  %v185_v31 = vmul.f32 %v380_v29, %v167_v13  ;;  %v186_v32 = vmul.f32 %v380_v29, %v168_v14  ;;  %v187_v33 = vmul.f32 %v380_v29, %v169_v15 }
  0x60   : > { %v188_v34 = vadd.f32 0.5, %v184_v30  ;;  %v189_v35 = vadd.f32 0.5, %v185_v31  ;;  %v190_v36 = vadd.f32 0.5, %v186_v32  ;;  %v191_v37 = vadd.f32 0.5, %v187_v33 }
  0x62   : > { %192 = vst [vmem:[%s151_s18] sm:$0xf] %v188_v34  ;;  %193 = vst [vmem:[%s151_s18 + $0x4] sm:$0xf] %v189_v35 }
  0x63   : > { %194 = vst [vmem:[%s151_s18 + $0x8] sm:$0xf] %v190_v36  ;;  %195 = vst [vmem:[%s151_s18 + $0xc] sm:$0xf] %v191_v37 }
  0x64   : > { %424 = shalt.err (!%p421_p5)
}
  0x65   : > { %s425_s17 = scalar_lea.hbm %s649_s5, 256  ;;  %s429_s24 = scalar_lea.hbm %s699_s1, 512 }
  0x66   : > { %p426_p4 = scmp.ne.s32.totalorder %s649_s5, %s425_s17  ;;  %p430_p12 = scmp.lt.u32.totalorder %s649_s5, %s699_s1 }
  0x67   : > { %p431_p1 = scmp.lt.u32.totalorder %s429_s24, %s425_s17  ;;  %p433_p8 = scmp.lt.u32.totalorder %s425_s17, %s649_s5 }
  0x68   : > { %p427_p7 = pnand %p426_p4, %p707_p9 }
  0x69   : > { %p432_p3 = por %p431_p1, %p430_p12 }
  0x6a   : > { %p428_p10 = pneg %p427_p7 }
  0x6b   : > { %p434_p11 = por %p433_p8, %p432_p3 }
  0x6d   : > { %p435_p0 = pnand %p434_p11, %p428_p10 }
  0x6f   : > { %438 = shalt.err (!%p435_p0)
}
  0x70   : > { %s499_s3 = smov 64   ;;  %s500_s4 = smov 4  }
  0x71   : > { %315 = dma.vmem_to_hbm [thread:$0]  (%p707_p9), %s644_s27, 256, %s649_s5, %s197_s9, %s499_s3, %s499_s3, %s500_s4  }
  0x72 PF: > { %s226_s18 = sand.u32 1, %s473_s6   ;;  %p708_p6 = scmp.ne.s32.totalorder %s704_s21, 0 }
  0x73   : > { %p709_p13 = scmp.ge.s32.totalorder %s493_s11, 2  ;;  %s227_s29 = scalar_lea.sflag [#allocation4], %s226_s18 }
  0x75   : > { %p322_p2 = pnand %p709_p13, %p708_p6 }
  0x77   : > { %468 = dma.done.wait (!%p322_p2), %s227_s29, 256  }
  0x78   : > { %470 = vsyncadd (!%p322_p2), %s227_s29, 4294967040  ;;  %s17_s11 = sadd.s32 1, %s493_s11   ;;  %s710_s6 = smov %s477_s7 }
  0x79   : > { %p14_p5 = scmp.ge.s32.totalorder %s17_s11, 4   ;;  %s711_s7 = smov %s481_s8 }
  0x7a   : > { %s712_s8 = smov %s567_s20  ;;  %s713_s9 = smov %s489_s10 }
  0x7b   : > { %s714_s10 = smov %s716_s14  ;;  %16 = sbr.rel (!%p14_p5) target bundleno = 6 (0x6), region = 69 }
  0x82   :  { %232 = vsyncpa [#allocation3], 1 }
  0x83   :  { %234 = vsyncpa [#allocation3 + $0x1], 1 }
  0x84   :  { %235 = vsyncpa [#allocation4], 1 }
  0x85   :  { %237 = vsyncpa [#allocation4 + $0x1], 1 }

</bundles_post_ra>
